<compile_context>
chip_gen: v7x
topology: tpu7x:2x2x1
jax: 0.10.0
libtpu: 0.0.40
codegen_flags: <defaults>
</compile_context>

<pallas_src>
import functools

import jax
import jax.numpy as jnp
from jax.experimental import pallas as pl
from jax.experimental.pallas import tpu as pltpu

_LANE = 128


def _stats_kernel(x_ref, mean_ref, inv_ref, *, eps, n_valid):
    """Pass 1: accumulate per-sample sum / sumsq; finalize mean and 1/(std+eps).

    x_ref:    (BN, C, T)     lane-dense tile of BN samples
    mean_ref: (BN, 1, 128)   resident across the spatial (reduction) grid axis
    inv_ref:  (BN, 1, 128)   resident across the spatial (reduction) grid axis
    """
    k = pl.program_id(1)

    @pl.when(k == 0)
    def _init():
        mean_ref[...] = jnp.zeros_like(mean_ref)
        inv_ref[...] = jnp.zeros_like(inv_ref)

    x = x_ref[...].astype(jnp.float32)
    # Single data pass: accumulate sum and sum-of-squares (f32 accumulators).
    mean_ref[...] += jnp.sum(x, axis=(1, 2), keepdims=True)
    inv_ref[...] += jnp.sum(x * x, axis=(1, 2), keepdims=True)

    @pl.when(k == pl.num_programs(1) - 1)
    def _finalize():
        s = mean_ref[...]          # per-sample sum   (broadcast over lanes)
        sq = inv_ref[...]          # per-sample sumsq (broadcast over lanes)
        mean = s * (1.0 / n_valid)
        # Unbiased variance (torch.std default, ddof=1); clamp tiny negative
        # values caused by f32 cancellation.
        # TODO(synk): n_valid == 1 divides by zero -> nan, same as torch.std.
        var = jnp.maximum((sq - s * mean) / (n_valid - 1.0), 0.0)
        # eps added to std (not var), matching the PyTorch module.  The
        # reciprocal is per-sample (tiny), so exact keeps full f32 accuracy;
        # approx=True would also be fine here.
        inv_ref[...] = pl.reciprocal(jnp.sqrt(var) + eps, approx=False)
        mean_ref[...] = mean


def _norm_kernel(mean_ref, inv_ref, x_ref, g_ref, b_ref, o_ref):
    """Pass 2: fused normalize + per-channel affine:  y = x * scale + shift."""
    x = x_ref[...].astype(jnp.float32)            # (BN, C, T)
    mean = mean_ref[...][:, :, :1]                # (BN, 1, 1)
    inv = inv_ref[...][:, :, :1]                  # (BN, 1, 1)
    scale = g_ref[...] * inv                      # (1,C,1)*(BN,1,1) -> (BN,C,1)
    shift = b_ref[...] - mean * scale             # (BN, C, 1)
    # 2 VALU ops per element (mul + add); per-channel values broadcast on lanes.
    o_ref[...] = (x * scale + shift).astype(o_ref.dtype)


def _choose_tiling(N, C, HW, elem_bytes, target_block_bytes):
    """Pick (samples_per_block BN, spatial_tile T, padded Np, padded HWp)."""
    hw_pad = -(-HW // _LANE) * _LANE                     # lane-dense last dim
    tgt_elems = max(_LANE, target_block_bytes // elem_bytes)
    sample_elems = C * hw_pad
    if sample_elems <= tgt_elems:
        # Small samples: whole (padded) spatial extent per block, batch samples.
        T = hw_pad
        BN = max(1, min(N, tgt_elems // sample_elems))
        # Keep >=2 blocks along the (parallel) sample axis when N allows, so
        # v7x megacore has work for both TensorCores and the pipeline overlaps.
        if N >= 2:
            BN = min(BN, max(1, N // 2))
    else:
        # Large samples: one sample per block, tile the spatial axis.
        BN = 1
        T = max(_LANE, ((tgt_elems // max(C, 1)) // _LANE) * _LANE)
        T = min(T, hw_pad)
    HWp = -(-hw_pad // T) * T
    Np = -(-N // BN) * BN
    return BN, T, Np, HWp


def layer_norm_pallas(x, gamma, beta, eps=1e-5, *, target_block_bytes=1 << 20):
    """x: (N, C, H, W); gamma/beta: (C,).  Matches the PyTorch LayerNorm above."""
    N, C, H, W = x.shape
    HW = H * W
    n_valid = C * HW  # true per-sample element count (zero padding excluded)

    BN, T, Np, HWp = _choose_tiling(N, C, HW, 4, target_block_bytes)
    n_blocks = Np // BN
    k_blocks = HWp // T

    # Lane-dense layout: (N, C, HW) with HW on lanes, C on sublanes.  Zero-pad
    # spatial to a multiple of the tile and batch to a multiple of BN.
    x3 = jnp.pad(x.reshape(N, C, HW), ((0, Np - N), (0, 0), (0, HWp - HW)))
    g3 = gamma.reshape(1, C, 1).astype(jnp.float32)
    b3 = beta.reshape(1, C, 1).astype(jnp.float32)

    # ---------------- pass 1: per-sample mean and 1/(std+eps) ----------------
    stats_kernel = functools.partial(
        _stats_kernel, eps=float(eps), n_valid=float(n_valid))
    mean, inv = pl.pallas_call(
        stats_kernel,
        out_shape=(jax.ShapeDtypeStruct((Np, 1, _LANE), jnp.float32),
                   jax.ShapeDtypeStruct((Np, 1, _LANE), jnp.float32)),
        grid_spec=pltpu.PrefetchScalarGridSpec(
            num_scalar_prefetch=0,
            grid=(n_blocks, k_blocks),
            in_specs=[pl.BlockSpec((BN, C, T), lambda i, k: (i, 0, k))],
            out_specs=[pl.BlockSpec((BN, 1, _LANE), lambda i, k: (i, 0, 0)),
                       pl.BlockSpec((BN, 1, _LANE), lambda i, k: (i, 0, 0))],
        ),
        compiler_params=pltpu.CompilerParams(
            dimension_semantics=("parallel", "arbitrary")),
    )(x3)

    # ---------------- pass 2: fused normalize + affine -----------------------
    out = pl.pallas_call(
        _norm_kernel,
        out_shape=jax.ShapeDtypeStruct((Np, C, HWp), x.dtype),
        grid_spec=pltpu.PrefetchScalarGridSpec(
            num_scalar_prefetch=0,
            grid=(n_blocks, k_blocks),
            in_specs=[
                pl.BlockSpec((BN, 1, _LANE), lambda i, k: (i, 0, 0)),
                pl.BlockSpec((BN, 1, _LANE), lambda i, k: (i, 0, 0)),
                # NOTE: pipeline_mode=pl.Buffered(3) on this streaming input is
                # a further tuning knob worth sweeping on real shapes.
                pl.BlockSpec((BN, C, T), lambda i, k: (i, 0, k)),
                pl.BlockSpec((1, C, 1), lambda i, k: (0, 0, 0)),
                pl.BlockSpec((1, C, 1), lambda i, k: (0, 0, 0)),
            ],
            out_specs=pl.BlockSpec((BN, C, T), lambda i, k: (i, 0, k)),
        ),
        compiler_params=pltpu.CompilerParams(
            dimension_semantics=("parallel", "parallel")),
    )(mean, inv, x3, g3, b3)

    return out[:N, :, :HW].reshape(N, C, H, W)


def layer_norm_ref(x, gamma, beta, eps=1e-5):
    N = x.shape[0]
    flat = x.reshape(N, -1)
    mean = flat.mean(axis=1).reshape(N, 1, 1, 1)
    std = jnp.sqrt(flat.var(axis=1, ddof=1)).reshape(N, 1, 1, 1)
    xn = (x - mean) / (std + eps)
    return xn * gamma.reshape(1, -1, 1, 1) + beta.reshape(1, -1, 1, 1)


if __name__ == "__main__":
    key = jax.random.PRNGKey(0)
    kx, kg = jax.random.split(key)

    # Primary shape (NCHW conv features, as the module implies).
    N, C, H, W = 2, 4, 16, 16
    x = jax.random.normal(kx, (N, C, H, W), dtype=jnp.float32)
    gamma = jax.random.uniform(kg, (C,), dtype=jnp.float32)  # torch .uniform_()
    beta = jnp.zeros((C,), dtype=jnp.float32)

    out = jax.block_until_ready(layer_norm_pallas(x, gamma, beta))
    ref = layer_norm_ref(x, gamma, beta)
    assert jnp.allclose(out, ref, atol=2e-5, rtol=2e-5), "mismatch (primary)"

    # Exercise the general tiling paths at small scale:
    # (a) spatial dim not a multiple of 128 (padding path) + odd batch.
    xb = jax.random.normal(jax.random.PRNGKey(1), (3, 4, 10, 10), jnp.float32)
    outb = jax.block_until_ready(layer_norm_pallas(xb, gamma, beta))
    assert jnp.allclose(outb, layer_norm_ref(xb, gamma, beta),
                        atol=2e-5, rtol=2e-5), "mismatch (padding)"

    # (b) several samples batched into one block (BN > 1).
    xc = jax.random.normal(jax.random.PRNGKey(2), (8, 4, 16, 16), jnp.float32)
    outc = jax.block_until_ready(layer_norm_pallas(xc, gamma, beta))
    assert jnp.allclose(outc, layer_norm_ref(xc, gamma, beta),
                        atol=2e-5, rtol=2e-5), "mismatch (batched samples)"

    # (c) force the tiled spatial-reduction path (k_blocks > 1, accumulators).
    outd = jax.block_until_ready(
        layer_norm_pallas(x, gamma, beta, target_block_bytes=2048))
    assert jnp.allclose(outd, ref, atol=2e-5, rtol=2e-5), "mismatch (tiled reduction)"

    print("KERNEL_OK")
</pallas_src>

<mosaic_0001>
module attributes {stable_mosaic.version = 11 : i64} {
  func.func @_stats_kernel(%arg0: i32, %arg1: i32, %arg2: memref<1x4x256xf32, #tpu.memory_space<vmem>>, %arg3: memref<1x1x128xf32, #tpu.memory_space<vmem>>, %arg4: memref<1x1x128xf32, #tpu.memory_space<vmem>>) attributes {dimension_semantics = [#tpu.dimension_semantics<parallel>, #tpu.dimension_semantics<arbitrary>], iteration_bounds = array<i64: 2, 1>, scalar_prefetch = 0 : i64, scratch_operands = 0 : i64, tpu.core_type = #tpu.core_type<tc>, window_params = [{transform_indices = @transform_0, window_bounds = array<i64: 1, 4, 256>}, {transform_indices = @transform_1, window_bounds = array<i64: 1, 1, 128>}, {transform_indices = @transform_2, window_bounds = array<i64: 1, 1, 128>}]} {
    %c0_i32 = arith.constant 0 : i32
    %0 = arith.cmpi eq, %arg1, %c0_i32 : i32
    %1 = arith.extui %0 : i1 to i32
    %c0_i32_0 = arith.constant 0 : i32
    %2 = arith.cmpi ne, %1, %c0_i32_0 : i32
    scf.if %2 {
      %cst_18 = arith.constant 0.000000e+00 : f32
      %20 = vector.broadcast %cst_18 : f32 to vector<1x1x128xf32>
      %c0_19 = arith.constant 0 : index
      %c0_20 = arith.constant 0 : index
      %c0_21 = arith.constant 0 : index
      %21 = vector.load %arg3[%c0_19, %c0_20, %c0_21] : memref<1x1x128xf32, #tpu.memory_space<vmem>>, vector<1x1x128xf32>
      tpu.vector_store %arg3[%c0_19, %c0_20, %c0_21], %20 {strides = array<i32>} : memref<1x1x128xf32, #tpu.memory_space<vmem>>, vector<1x1x128xf32>,
      %cst_22 = arith.constant 0.000000e+00 : f32
      %22 = vector.broadcast %cst_22 : f32 to vector<1x1x128xf32>
      %c0_23 = arith.constant 0 : index
      %c0_24 = arith.constant 0 : index
      %c0_25 = arith.constant 0 : index
      %23 = vector.load %arg4[%c0_23, %c0_24, %c0_25] : memref<1x1x128xf32, #tpu.memory_space<vmem>>, vector<1x1x128xf32>
      tpu.vector_store %arg4[%c0_23, %c0_24, %c0_25], %22 {strides = array<i32>} : memref<1x1x128xf32, #tpu.memory_space<vmem>>, vector<1x1x128xf32>,
    } else {
    }
    %c0 = arith.constant 0 : index
    %c0_1 = arith.constant 0 : index
    %c0_2 = arith.constant 0 : index
    %3 = vector.load %arg2[%c0, %c0_1, %c0_2] : memref<1x4x256xf32, #tpu.memory_space<vmem>>, vector<1x4x256xf32>
    %c0_3 = arith.constant 0 : index
    %c0_4 = arith.constant 0 : index
    %c0_5 = arith.constant 0 : index
    %4 = vector.load %arg3[%c0_3, %c0_4, %c0_5] : memref<1x1x128xf32, #tpu.memory_space<vmem>>, vector<1x1x128xf32>
    %cst = arith.constant dense<0.000000e+00> : vector<1xf32>
    %5 = vector.multi_reduction <add>, %3, %cst [1, 2] : vector<1x4x256xf32> to vector<1xf32>
    %6 = vector.shape_cast %5 : vector<1xf32> to vector<1x1x1xf32>
    %7 = vector.broadcast %6 : vector<1x1x1xf32> to vector<1x1x128xf32>
    %8 = arith.addf %4, %7 : vector<1x1x128xf32>
    %c0_6 = arith.constant 0 : index
    %c0_7 = arith.constant 0 : index
    %c0_8 = arith.constant 0 : index
    %9 = vector.load %arg3[%c0_6, %c0_7, %c0_8] : memref<1x1x128xf32, #tpu.memory_space<vmem>>, vector<1x1x128xf32>
    tpu.vector_store %arg3[%c0_6, %c0_7, %c0_8], %8 {strides = array<i32>} : memref<1x1x128xf32, #tpu.memory_space<vmem>>, vector<1x1x128xf32>,
    %c0_9 = arith.constant 0 : index
    %c0_10 = arith.constant 0 : index
    %c0_11 = arith.constant 0 : index
    %10 = vector.load %arg4[%c0_9, %c0_10, %c0_11] : memref<1x1x128xf32, #tpu.memory_space<vmem>>, vector<1x1x128xf32>
    %11 = arith.mulf %3, %3 : vector<1x4x256xf32>
    %cst_12 = arith.constant dense<0.000000e+00> : vector<1xf32>
    %12 = vector.multi_reduction <add>, %11, %cst_12 [1, 2] : vector<1x4x256xf32> to vector<1xf32>
    %13 = vector.shape_cast %12 : vector<1xf32> to vector<1x1x1xf32>
    %14 = vector.broadcast %13 : vector<1x1x1xf32> to vector<1x1x128xf32>
    %15 = arith.addf %10, %14 : vector<1x1x128xf32>
    %c0_13 = arith.constant 0 : index
    %c0_14 = arith.constant 0 : index
    %c0_15 = arith.constant 0 : index
    %16 = vector.load %arg4[%c0_13, %c0_14, %c0_15] : memref<1x1x128xf32, #tpu.memory_space<vmem>>, vector<1x1x128xf32>
    tpu.vector_store %arg4[%c0_13, %c0_14, %c0_15], %15 {strides = array<i32>} : memref<1x1x128xf32, #tpu.memory_space<vmem>>, vector<1x1x128xf32>,
    %c0_i32_16 = arith.constant 0 : i32
    %17 = arith.cmpi eq, %arg1, %c0_i32_16 : i32
    %18 = arith.extui %17 : i1 to i32
    %c0_i32_17 = arith.constant 0 : i32
    %19 = arith.cmpi ne, %18, %c0_i32_17 : i32
    scf.if %19 {
      %c0_18 = arith.constant 0 : index
      %c0_19 = arith.constant 0 : index
      %c0_20 = arith.constant 0 : index
      %20 = vector.load %arg3[%c0_18, %c0_19, %c0_20] : memref<1x1x128xf32, #tpu.memory_space<vmem>>, vector<1x1x128xf32>
      %c0_21 = arith.constant 0 : index
      %c0_22 = arith.constant 0 : index
      %c0_23 = arith.constant 0 : index
      %21 = vector.load %arg4[%c0_21, %c0_22, %c0_23] : memref<1x1x128xf32, #tpu.memory_space<vmem>>, vector<1x1x128xf32>
      %cst_24 = arith.constant 9.765625E-4 : f32
      %22 = vector.broadcast %cst_24 : f32 to vector<1x1x128xf32>
      %23 = arith.mulf %20, %22 : vector<1x1x128xf32>
      %24 = arith.mulf %20, %23 : vector<1x1x128xf32>
      %25 = arith.subf %21, %24 : vector<1x1x128xf32>
      %cst_25 = arith.constant 1.023000e+03 : f32
      %26 = vector.broadcast %cst_25 : f32 to vector<1x1x128xf32>
      %27 = arith.divf %25, %26 : vector<1x1x128xf32>
      %cst_26 = arith.constant 0.000000e+00 : f32
      %28 = vector.broadcast %cst_26 : f32 to vector<1x1x128xf32>
      %29 = arith.maximumf %27, %28 : vector<1x1x128xf32>
      %30 = math.sqrt %29 : vector<1x1x128xf32>
      %cst_27 = arith.constant 9.99999974E-6 : f32
      %31 = vector.broadcast %cst_27 : f32 to vector<1x1x128xf32>
      %32 = arith.addf %30, %31 : vector<1x1x128xf32>
      %33 = tpu.reciprocal %32 : vector<1x1x128xf32> -> vector<1x1x128xf32>
      %c0_28 = arith.constant 0 : index
      %c0_29 = arith.constant 0 : index
      %c0_30 = arith.constant 0 : index
      %34 = vector.load %arg4[%c0_28, %c0_29, %c0_30] : memref<1x1x128xf32, #tpu.memory_space<vmem>>, vector<1x1x128xf32>
      tpu.vector_store %arg4[%c0_28, %c0_29, %c0_30], %33 {strides = array<i32>} : memref<1x1x128xf32, #tpu.memory_space<vmem>>, vector<1x1x128xf32>,
      %c0_31 = arith.constant 0 : index
      %c0_32 = arith.constant 0 : index
      %c0_33 = arith.constant 0 : index
      %35 = vector.load %arg3[%c0_31, %c0_32, %c0_33] : memref<1x1x128xf32, #tpu.memory_space<vmem>>, vector<1x1x128xf32>
      tpu.vector_store %arg3[%c0_31, %c0_32, %c0_33], %23 {strides = array<i32>} : memref<1x1x128xf32, #tpu.memory_space<vmem>>, vector<1x1x128xf32>,
    } else {
    }
    return
  }
  func.func @transform_0(%arg0: i32, %arg1: i32) -> (i32, i32, i32) {
    %c0_i32 = arith.constant 0 : i32
    %c0_i32_0 = arith.constant 0 : i32
    return %arg0, %c0_i32, %arg1 : i32, i32, i32
  }
  func.func @transform_1(%arg0: i32, %arg1: i32) -> (i32, i32, i32) {
    %c0_i32 = arith.constant 0 : i32
    %c0_i32_0 = arith.constant 0 : i32
    %c0_i32_1 = arith.constant 0 : i32
    return %arg0, %c0_i32, %c0_i32_0 : i32, i32, i32
  }
  func.func @transform_2(%arg0: i32, %arg1: i32) -> (i32, i32, i32) {
    %c0_i32 = arith.constant 0 : i32
    %c0_i32_0 = arith.constant 0 : i32
    %c0_i32_1 = arith.constant 0 : i32
    return %arg0, %c0_i32, %c0_i32_0 : i32, i32, i32
  }
}

</mosaic_0001>

<bundles_post_ra>
// kernel: tpu_custom_call.1
= control target key start
LH: loop header
LB: loop body
LE: loop exit
PB: predicated region body
PF: predicated region fallthrough
CT: control target
= control target key end

     0   :  { %8 = vsyncpa [#allocation3], 0  ;;  %s861_s0 = inlined_call_operand.hbm [shape: f32[2,4,256], index: 0, kind: input, shape index: {}]   ;;  %s862_s1 = inlined_call_operand.hbm [shape: f32[2,1,128], index: 1, kind: output, shape index: {0}]   ;;  %s863_s2 = inlined_call_operand.hbm [shape: f32[2,1,128], index: 2, kind: output, shape index: {1}]  }
   0x1   :  { %10 = vsyncpa [#allocation3 + $0x1], 0 }
   0x2   :  { %11 = vsyncpa [#allocation4], 0 }
   0x3   :  { %13 = vsyncpa [#allocation4 + $0x1], 0 }
   0x4   :  { %14 = vsyncpa [#allocation7], 0 }
   0x5   :  { %16 = vsyncpa [#allocation7 + $0x1], 0  ;;  %s638_s9 = smov 0   ;;  %s640_s10 = smov 0  }
   0x6   :  { %s642_s11 = smov 0   ;;  %s644_s12 = smov 0  }
   0x7   :  { %s646_s13 = smov 0   ;;  %s648_s14 = smov 0  }
   0x8 LB: > { %s386_s15 = sadd.s32 4294967295, %s617_s14   ;;  %s387_s16 = sadd.s32 4294967294, %s617_s14   ;;  %s617_s14 = sphi %s648_s14, %s22_s14   ;;  %s613_s13 = sphi %s646_s13, %s879_s13   ;;  %s609_s12 = sphi %s644_s12, %s878_s12   ;;  %s605_s11 = sphi %s642_s11, %s877_s11   ;;  %s601_s10 = sphi %s640_s10, %s876_s10   ;;  %s597_s9 = sphi %s638_s9, %s875_s9  }
   0x9   : > { %s34_s17 = sadd.s32 1, %s613_s13  ;;  %s43_s18 = sadd.s32 1, %s605_s11 }
   0xa   : > { %p36_p0 = scmp.ge.s32.totalorder %s34_s17, 2  ;;  %p50_p1 = scmp.ne.s32.totalorder %s605_s11, %s601_s10 }
   0xb   : > { %p51_p2 = scmp.eq.s32.totalorder %s617_s14, 0  ;;  %p56_p3 = scmp.ne.s32.totalorder %s601_s10, %s597_s9 }
   0xc   : > { %s881_s17 = smov (%p36_p0, %s34_s17), 0  ;;  %p57_p5 = scmp.eq.s32.totalorder %s386_s15, 0 }
   0xd   : > { %p679_p4 = por %p51_p2, %p50_p1  ;;  %s38_s20 = ssub.s32 %s613_s13, %s881_s17 }
   0xe   : > { %p80_p6 = scmp.eq.s32.totalorder %s386_s15, 1  ;;  %p41_p7 = scmp.eq.s32.totalorder %s38_s20, 0 }
   0xf   : > { %p685_p8 = por %p57_p5, %p56_p3  ;;  %p86_p10 = scmp.eq.s32.totalorder %s387_s16, 1 }
  0x10   : > { %p689_p9 = por %p80_p6, %p50_p1  ;;  %p417_p13 = scmp.lt.s32.totalorder %s617_s14, 2 }
  0x11   : > { %s694_s23 = scalar_select %p41_p7, %s605_s11, %s43_s18  }
  0x12   : > { %s867_s22 = scalar_select %p689_p9, 1, 0 }
  0x13   : > { %p696_p11 = por %p86_p10, %p56_p3  ;;  %s132_s25 = sand.u32 1, %s605_s11  }
  0x14   : > { %s390_s26 = sshll.u32 %s132_s25, 3  ;;  %s399_s27 = sshll.u32 %s613_s13, 7 }
  0x15   : > { %s868_s24 = scalar_select %p696_p11, 1, 0 }
  0x16   : > { %s707_s30 = scalar_lea.hbm %s861_s0, %s399_s27  ;;  %s136_s3 = scalar_lea.vmem [#allocation2], %s390_s26 }
  0x17   : > { %s146_s4 = sshll.u32 %s136_s3, 4  ;;  %p713_p0 = pnand %p417_p13, %p679_p4  ;;  %s709_s4 = int_to_ptr.vmem [resolvable:$true] %s146_s4 }
  0x18   : > { %s133_s6 = scalar_lea.sflag [#allocation3], %s132_s25  ;;  %s473_s7 = scalar_lea.hbm %s707_s30, 128 }
  0x19   : > { %p474_p3 = scmp.ne.s32.totalorder %s707_s30, %s473_s7  ;;  %p475_p5 = pneg %p713_p0 }
  0x1a   : > { %s478_s16 = scalar_lea.hbm %s861_s0, 256  ;;  %p479_p4 = scmp.lt.u32.totalorder %s707_s30, %s861_s0 }
  0x1b   : > { %p476_p6 = pnand %p475_p5, %p474_p3  ;;  %p480_p10 = scmp.lt.u32.totalorder %s478_s16, %s473_s7 }
  0x1c   : > { %p482_p12 = scmp.lt.u32.totalorder %s473_s7, %s707_s30 }
  0x1d   : > { %p477_p7 = pneg %p476_p6  ;;  %p481_p13 = por %p480_p10, %p479_p4 }
  0x1f   : > { %p483_p1 = por %p482_p12, %p481_p13 }
  0x21   : > { %p484_p2 = pnand %p483_p1, %p477_p7 }
  0x23   : > { %487 = shalt.err (!%p484_p2)
}
  0x24   : > { %s488_s20 = scalar_lea.vmem %s709_s4, 128  ;;  %s619_s25 = smov [#allocation2]  }
  0x25   : > { %p489_p3 = scmp.ne.s32.totalorder %s709_s4, %s488_s20  ;;  %s493_s26 = sshll.u32 %s619_s25, 4  ;;  %s494_s26 = int_to_ptr.vmem [resolvable:$false] %s493_s26 }
  0x26   : > { %s495_s27 = scalar_lea.vmem %s494_s26, 256  ;;  %p496_p9 = scmp.lt.s32.totalorder %s709_s4, %s494_s26 }
  0x27   : > { %p491_p6 = pnand %p489_p3, %p475_p5  ;;  %p497_p4 = scmp.lt.s32.totalorder %s495_s27, %s488_s20 }
  0x29   : > { %p492_p11 = pneg %p491_p6  ;;  %p498_p10 = por %p497_p4, %p496_p9 }
  0x2b   : > { %p499_p12 = pnand %p498_p10, %p492_p11 }
  0x2d   : > { %502 = shalt.err (!%p499_p12)
}
  0x2e   : > { %409 = dma.hbm_to_vmem [thread:$0]  (!%p713_p0), %s707_s30, 128, %s709_s4, %s133_s6  }
  0x2f   : > { %p870_p1 = scmp.lt.s32.totalorder %s617_s14, 3  ;;  %p871_p2 = scmp.ge.s32.totalorder %s617_s14, 1 }
  0x31   : > { %p152_p5 = pnand %p871_p2, %p870_p1 }
  0x32   : > { %s749_s28 = sand.u32 (!%p152_p5), 1, %s601_s10  }
  0x33   : > { %155 = sbr.rel (%p152_p5) target bundleno = 293 (0x125), region = 24  ;;  %s394_s29 = sshll.u32 (!%p152_p5), %s749_s28, 3 }
  0x34   : > { %s158_s3 = scalar_lea.sflag (!%p152_p5), [#allocation3], %s749_s28  ;;  %s161_s7 = scalar_lea.vmem (!%p152_p5), [#allocation2], %s394_s29 }
  0x3a   : > { %584 = dma.done.wait (%p685_p8), %s158_s3, 128  }
  0x3b   : > { %586 = vsyncadd (%p685_p8), %s158_s3, 4294967168  ;;  %s758_s30 = scalar_lea.vmem [#allocation5], %s749_s28  ;;  %v620_v0 = vmov 0.0   ;;  %vm197_vm0 = vcmask 1043456   ;;  %v192_v1 = vld [vmem:[%s161_s7] sm:$0xff]  ;;  %s762_s21 = scalar_lea.vmem [#allocation6], %s749_s28 }
  0x3c   : > { %190 = vst [vmem:[%s758_s30] sm:$0x1] %v620_v0  ;;  %v195_v2 = vcombine.high %v192_v1, %v192_v1  ;;  %v198_v3 = vsel %vm197_vm0, %v192_v1, 0.0  ;;  %v212_v4 = vmul.f32 %v192_v1, %v192_v1  ;;  %191 = vst [vmem:[%s762_s21] sm:$0x1] %v620_v0  ;;  %s395_s4 = sshll.u32 %s609_s12, 4  ;;  %s268_s5 = sshll.u32 %s758_s30, 4  ;;  %s779_s5 = int_to_ptr.vmem [resolvable:$true] %s268_s5 }
  0x3d   : > { %s777_s15 = scalar_lea.hbm %s862_s1, %s395_s4  ;;  %s252_s16 = scalar_lea.sflag [#allocation4], %s749_s28 }
  0x3e   : > { %v199_v5 = vsel %vm197_vm0, %v195_v2, 0.0  ;;  %v214_v6 = vcombine.high %v212_v4, %v212_v4  ;;  %v216_v7 = vsel %vm197_vm0, %v212_v4, 0.0  ;;  %s503_s18 = scalar_lea.vmem %s779_s5, 16  ;;  %p872_p9 = scmp.ne.s32.totalorder %s867_s22, 0 }
  0x3f   : > { %v200_v8 = vadd.f32 %v199_v5, %v198_v3  ;;  %p504_p8 = scmp.ne.s32.totalorder %s779_s5, %s503_s18  ;;  %s621_s19 = smov [#allocation5]  }
  0x40   : > { %v217_v9 = vsel %vm197_vm0, %v214_v6, 0.0  ;;  %s507_s20 = sshll.u32 %s621_s19, 4  ;;  %s508_s20 = int_to_ptr.vmem [resolvable:$false] %s507_s20 }
  0x41   : > { %201 = vadd.xlane.f32.xlu0 %v200_v8  ;;  %v218_v10 = vadd.f32 %v217_v9, %v216_v7  ;;  %p505_p11 = pnand %p504_p8, %p872_p9  ;;  %s509_s25 = scalar_lea.vmem %s508_s20, 32 }
  0x42   : > { %p510_p7 = scmp.lt.s32.totalorder %s779_s5, %s508_s20  ;;  %p511_p13 = scmp.lt.s32.totalorder %s509_s25, %s503_s18 }
  0x43   : > { %v193_v21 = vld [vmem:[%s758_s30] sm:$0x1]  ;;  %p506_p0 = pneg %p505_p11 }
  0x44   : > { %v211_v26 = vld [vmem:[%s762_s21] sm:$0x1]  ;;  %p512_p3 = por %p511_p13, %p510_p7 }
  0x45   : > { %219 = vadd.xlane.f32.xlu0 %v218_v10 }
  0x46   : > { %p513_p6 = pnand %p512_p3, %p506_p0 }
  0xce   : > { %v202_v11 = vpop.xlane.xlu0 %201 }
  0xcf   : > { %v203_v12 = vrot.slane %v202_v11, 4 }
  0xd1   : > { %v204_v13 = vadd.f32 %v203_v12, %v202_v11 }
  0xd2   : > { %v220_v14 = vpop.xlane.xlu0 %219 }
  0xd3   : > { %v205_v15 = vrot.slane %v204_v13, 2  ;;  %v221_v16 = vrot.slane %v220_v14, 4 }
  0xd5   : > { %v206_v17 = vadd.f32 %v205_v15, %v204_v13  ;;  %v222_v18 = vadd.f32 %v221_v16, %v220_v14 }
  0xd7   : > { %v207_v19 = vrot.slane %v206_v17, 1  ;;  %v223_v20 = vrot.slane %v222_v18, 2 }
  0xd9   : > { %v208_v22 = vadd.f32 %v207_v19, %v206_v17  ;;  %v224_v23 = vadd.f32 %v223_v20, %v222_v18 }
  0xdb   : > { %v209_v24 = vadd.f32 %v208_v22, %v193_v21  ;;  %v225_v25 = vrot.slane %v224_v23, 1 }
  0xdd   : > { %210 = vst [vmem:[%s758_s30] sm:$0x1] %v209_v24  ;;  %v226_v27 = vadd.f32 %v225_v25, %v224_v23 }
  0xdf   : > { %v227_v28 = vadd.f32 %v226_v27, %v211_v26 }
  0xe1   : > { %228 = vst [vmem:[%s762_s21] sm:$0x1] %v227_v28 }
  0xe4   : > { %v232_v29 = vld [vmem:[%s758_s30] sm:$0x1] }
  0xe5   : > { %v234_v30 = vmul.f32 0.0009765625, %v232_v29 }
  0xe7   : > { %v235_v31 = vmul.f32 %v234_v30, %v232_v29  ;;  %250 = vst [vmem:[%s758_s30] sm:$0x1] %v234_v30 }
  0xe8   : > { %516 = shalt.err (!%p513_p6)
}
  0xe9   : > { %s517_s26 = scalar_lea.hbm %s777_s15, 16  ;;  %s521_s3 = scalar_lea.hbm %s862_s1, 32 }
  0xea   : > { %p518_p4 = scmp.ne.s32.totalorder %s777_s15, %s517_s26  ;;  %p522_p1 = scmp.lt.u32.totalorder %s777_s15, %s862_s1 }
  0xeb   : > { %p523_p2 = scmp.lt.u32.totalorder %s521_s3, %s517_s26  ;;  %p525_p8 = scmp.lt.u32.totalorder %s517_s26, %s777_s15 }
  0xec   : > { %p519_p10 = pnand %p518_p4, %p872_p9 }
  0xed   : > { %p524_p5 = por %p523_p2, %p522_p1 }
  0xee   : > { %p520_p12 = pneg %p519_p10 }
  0xef   : > { %p526_p11 = por %p525_p8, %p524_p5 }
  0xf1   : > { %p527_p0 = pnand %p526_p11, %p520_p12 }
  0xf3   : > { %530 = shalt.err (!%p527_p0)
}
  0xf4   : > { %402 = dma.vmem_to_hbm [thread:$0]  (%p872_p9), %s779_s5, 16, %s777_s15, %s252_s16   ;;  %v233_v32 = vld [vmem:[%s762_s21] sm:$0x1] }
  0xf5   : > { %v236_v33 = vsub.f32 %v233_v32, %v235_v31  ;;  %s281_s6 = sshll.u32 %s762_s21, 4  ;;  %s811_s15 = scalar_lea.hbm %s863_s2, %s395_s4  ;;  %s813_s6 = int_to_ptr.vmem [resolvable:$true] %s281_s6 }
  0xf6   : > { %s256_s16 = scalar_lea.sflag [#allocation7], %s749_s28  ;;  %s531_s18 = scalar_lea.vmem %s813_s6, 16 }
  0xf7   : > { %v238_v34 = vmul.f32 0.0009775171, %v236_v33  ;;  %p532_p7 = scmp.ne.s32.totalorder %s813_s6, %s531_s18  ;;  %s622_s19 = smov [#allocation6]  }
  0xf8   : > { %s535_s12 = sshll.u32 %s622_s19, 4  ;;  %s536_s12 = int_to_ptr.vmem [resolvable:$false] %s535_s12 }
  0xf9   : > { %v239_v35 = vmax.f32 %v238_v34, 0.0  ;;  %p533_p13 = pnand %p532_p7, %p872_p9  ;;  %s537_s20 = scalar_lea.vmem %s536_s12, 32 }
  0xfa   : > { %p538_p6 = scmp.lt.s32.totalorder %s813_s6, %s536_s12  ;;  %p539_p4 = scmp.lt.s32.totalorder %s537_s20, %s531_s18 }
  0xfb   : > { %469 = vrsqrt.f32 %v239_v35  ;;  %vm242_vm1 = vcmp.eq.f32.partialorder %v239_v35, inf  ;;  %v245_v38 = vand.u32 2147483648, %v239_v35  ;;  %vm244_vm2 = vcmp.eq.f32.partialorder %v239_v35, 0.0  ;;  %p534_p3 = pneg %p533_p13 }
  0xfc   : > { %p540_p10 = por %p539_p4, %p538_p6 }
  0xfe   : > { %p541_p12 = pnand %p540_p10, %p534_p3 }
 0x105   : > { %v470_v36 = vpop.eup %469 }
 0x106   : > { %v241_v37 = vmul.f32 %v470_v36, %v239_v35 }
 0x108   : > { %v243_v39 = vsel %vm242_vm1, %v239_v35, %v241_v37 }
 0x109   : > { %v246_v40 = vsel %vm244_vm2, %v245_v38, %v243_v39 }
 0x10a   : > { %v247_v41 = vadd.f32 1e-05, %v246_v40 }
 0x10c   : > { %471 = vrcp.f32 %v247_v41 }
 0x116   : > { %v472_v42 = vpop.eup %471 }
 0x117   : > { %249 = vst [vmem:[%s762_s21] sm:$0x1] %v472_v42 }
 0x118   : > { %544 = shalt.err (!%p541_p12)
}
 0x119   : > { %s545_s28 = scalar_lea.hbm %s811_s15, 16  ;;  %s549_s25 = scalar_lea.hbm %s863_s2, 32 }
 0x11a   : > { %p546_p1 = scmp.ne.s32.totalorder %s811_s15, %s545_s28  ;;  %p550_p8 = scmp.lt.u32.totalorder %s811_s15, %s863_s2 }
 0x11b   : > { %p551_p11 = scmp.lt.u32.totalorder %s549_s25, %s545_s28  ;;  %p553_p7 = scmp.lt.u32.totalorder %s545_s28, %s811_s15 }
 0x11c   : > { %p547_p2 = pnand %p546_p1, %p872_p9 }
 0x11d   : > { %p552_p0 = por %p551_p11, %p550_p8 }
 0x11e   : > { %p548_p5 = pneg %p547_p2 }
 0x11f   : > { %p554_p13 = por %p553_p7, %p552_p0 }
 0x121   : > { %p555_p3 = pnand %p554_p13, %p548_p5 }
 0x123   : > { %558 = shalt.err (!%p555_p3)
}
 0x124   : > { %403 = dma.vmem_to_hbm [thread:$0]  (%p872_p9), %s813_s6, 16, %s811_s15, %s256_s16  }
 0x125 PF: > { %s293_s29 = sand.u32 1, %s597_s9   ;;  %p873_p6 = scmp.ne.s32.totalorder %s868_s24, 0 }
 0x126   : > { %p874_p4 = scmp.ge.s32.totalorder %s617_s14, 2  ;;  %s294_s3 = scalar_lea.sflag [#allocation4], %s293_s29 }
 0x128   : > { %p411_p10 = pnand %p874_p4, %p873_p6 }
 0x12a   : > { %588 = dma.done.wait (!%p411_p10), %s294_s3, 16  }
 0x12b   : > { %590 = vsyncadd (!%p411_p10), %s294_s3, 4294967280  ;;  %s302_s7 = scalar_lea.sflag [#allocation7], %s293_s29 }
 0x12c   : > { %592 = dma.done.wait (!%p411_p10), %s302_s7, 16  }
 0x12d   : > { %594 = vsyncadd (!%p411_p10), %s302_s7, 4294967280  ;;  %s22_s14 = sadd.s32 1, %s617_s14   ;;  %s875_s9 = smov %s601_s10 }
 0x12e   : > { %p19_p12 = scmp.ge.s32.totalorder %s22_s14, 4   ;;  %s876_s10 = smov %s605_s11 }
 0x12f   : > { %s877_s11 = smov %s694_s23  ;;  %s878_s12 = smov %s613_s13 }
 0x130   : > { %s879_s13 = smov %s881_s17  ;;  %21 = sbr.rel (!%p19_p12) target bundleno = 8 (0x8), region = 94 }
 0x137   :  { %306 = vsyncpa [#allocation3], 1 }
 0x138   :  { %308 = vsyncpa [#allocation3 + $0x1], 1 }
 0x139   :  { %309 = vsyncpa [#allocation4], 1 }
 0x13a   :  { %311 = vsyncpa [#allocation4 + $0x1], 1 }
 0x13b   :  { %312 = vsyncpa [#allocation7], 1 }
 0x13c   :  { %314 = vsyncpa [#allocation7 + $0x1], 1 }

</bundles_post_ra>
